<compile_context>
chip_gen: v5e
topology: v5e:2x2
jax: 0.10.0
libtpu: 0.0.40
codegen_flags: <defaults>
</compile_context>

<pallas_src>
import functools

import jax
import jax.numpy as jnp
from jax.experimental import pallas as pl
from jax.experimental.pallas import tpu as pltpu


def _round_up(n, m):
    return ((n + m - 1) // m) * m


# ----------------------------------------------------------------------------
# Kernel
# ----------------------------------------------------------------------------
def sdqn_kernel(x_ref,
                w1_ref, b1_ref, w2_ref, b2_ref, w3_ref, b3_ref,   # encoder
                w4_ref, b4_ref, w5_ref, b5_ref, w6_ref, b6_ref,   # head
                o_ref):
    # bf16 operands -> f32 accumulate on the MXU; elementwise math stays f32
    # (v5e VPU has no bf16 ALU path).
    def lin(h_f32, w_ref, b_ref):
        return jnp.dot(h_f32.astype(jnp.bfloat16), w_ref[...],
                       preferred_element_type=jnp.float32) + b_ref[...]

    x = x_ref[...]                                   # (TB, in_pad) f32

    # ----- encoder -----
    h = jnp.maximum(lin(x, w1_ref, b1_ref), 0.0)
    h = jnp.maximum(lin(h, w2_ref, b2_ref), 0.0)
    f = lin(h, w3_ref, b3_ref)

    # L2Norm along dim=1 (feature dim); padded feature columns are exactly zero
    # so they do not perturb the norm; eps guards all-zero / padded batch rows.
    sq = jnp.sum(f * f, axis=1, keepdims=True)
    f = f * jax.lax.rsqrt(sq + 1e-12)

    # ----- head -----
    h = jnp.maximum(lin(f, w4_ref, b4_ref), 0.0)
    h = jnp.maximum(lin(h, w5_ref, b5_ref), 0.0)
    out = lin(h, w6_ref, b6_ref)                     # (TB, out_pad) f32

    # bf16 writeback: halves the dominant output DMA stream; precision already
    # bounded by the bf16 matmul operands.
    o_ref[...] = out.astype(o_ref.dtype)


# ----------------------------------------------------------------------------
# Parameter preparation (done ONCE, outside the forward path)
# ----------------------------------------------------------------------------
def prepare_params(params, lane_multiple=128):
    """params: list of (W, b) in PyTorch (out, in) layout, encoder L1..head L3.

    Every layer width is zero-padded to a multiple of `lane_multiple` so all
    weight tiles / activations / the output store are lane-dense.  Zero padding
    is exact: padded input columns hit zero weight rows; padded hidden/feature
    columns come out exactly zero (zero weight cols + zero bias) and contribute
    nothing downstream, including the L2 norm.

    Returns (flat_args, outputs, in_pad, out_pad) where flat_args alternates
    bf16 weight (in_pad, out_pad) and f32 bias (1, out_pad).
    """
    outputs = int(params[-1][0].shape[0])
    flat = []
    for (w, b) in params:
        wt = jnp.asarray(w, jnp.float32).T            # (in, out)
        bb = jnp.asarray(b, jnp.float32)[None, :]     # (1, out)
        ip = _round_up(wt.shape[0], lane_multiple)
        op = _round_up(wt.shape[1], lane_multiple)
        wt = jnp.pad(wt, ((0, ip - wt.shape[0]), (0, op - wt.shape[1])))
        bb = jnp.pad(bb, ((0, 0), (0, op - bb.shape[1])))
        flat.append(wt.astype(jnp.bfloat16))          # weights in bf16 (fast MXU path)
        flat.append(bb)                               # biases in f32
    in_pad = int(flat[0].shape[0])
    out_pad = int(flat[-2].shape[1])
    return tuple(flat), outputs, in_pad, out_pad


# ----------------------------------------------------------------------------
# Forward wrapper
# ----------------------------------------------------------------------------
def sdqn_forward(x, flat_params, outputs, in_pad, out_pad, tb=1024):
    """x: (B, inputs) f32. flat_params from prepare_params()."""
    x = jnp.asarray(x, jnp.float32)
    B, inputs = x.shape

    # Pad the input feature dim once (zero columns hit zero weight rows).
    if in_pad != inputs:
        x = jnp.pad(x, ((0, 0), (0, in_pad - inputs)))

    w_bytes = sum(int(p.size) * p.dtype.itemsize for p in flat_params)
    max_w = max(int(p.shape[-1]) for p in flat_params[0::2])
    max_w = max(max_w, in_pad)

    def vmem_needed(t):
        io = 2 * t * in_pad * 4 + 2 * t * out_pad * 2   # double-buffered x (f32) / out (bf16)
        act = 4 * t * max_w * 4                         # live f32 intermediates (generous)
        return w_bytes + io + act

    # Per-chip scoped-VMEM ceiling: headroom below physical (v7x: 64 MiB per TC),
    # but allow well past the 16/32 MiB scoped defaults on v5e/v6e (128 MiB phys).
    try:
        phys = int(pltpu.get_tpu_info().vmem_capacity_bytes)
    except Exception:  # interpret mode / query unavailable -> conservative (v7x per-TC)
        phys = 64 * 1024 * 1024
    cap = max(16 * 1024 * 1024, min(phys - 8 * 1024 * 1024, 100 * 1024 * 1024))

    # Batch tile: as large as possible to amortize the per-grid-step overhead,
    # multiple of 8 sublanes, shrunk only if it would blow the scoped-VMEM cap.
    b8 = _round_up(B, 8)
    tb = _round_up(min(tb, b8), 8)
    while vmem_needed(tb) * 3 // 2 > cap and tb > 64:
        tb = _round_up(max(64, tb // 2), 8)
    # TODO(synk): for pixel-scale inputs (~28k flattened) with large hiddens on
    # v7x, resident bf16 w1 alone approaches the 64 MiB per-TC VMEM; that case
    # needs a second "arbitrary" grid axis K-tiling layer 1 with a VMEM accumulator.

    # Guarantee >= 2 batch tiles when there is enough batch so that
    # dimension_semantics=("parallel",) can shard tiles across v7x's 2 TensorCores
    # (no-op cost on single-TC v5e/v6e).
    if b8 // tb < 2 and b8 >= 32:
        tb = _round_up((b8 + 1) // 2, 16)

    b_pad = _round_up(B, tb)
    if b_pad != B:
        x = jnp.pad(x, ((0, b_pad - B), (0, 0)))
    grid = (b_pad // tb,)

    # Activations/output are tiled over batch; weights/biases are full resident
    # blocks (constant index_map -> fetched once, reused every grid step).
    x_spec = pl.BlockSpec((tb, in_pad), lambda i: (i, 0))
    out_spec = pl.BlockSpec((tb, out_pad), lambda i: (i, 0))
    param_specs = [pl.BlockSpec(p.shape, lambda i: (0, 0)) for p in flat_params]

    # Advisory cost estimate (padded dims) for XLA scheduling around this call.
    dims = [(int(w.shape[0]), int(w.shape[1])) for w in flat_params[0::2]]
    flops = 2 * b_pad * sum(di * do for (di, do) in dims)
    bytes_accessed = int(b_pad * in_pad * 4 + w_bytes + b_pad * out_pad * 2)
    cost = pl.CostEstimate(flops=int(flops), transcendentals=int(b_pad),
                           bytes_accessed=bytes_accessed)

    # Always set the scoped-VMEM limit explicitly (v5e's default is only 16 MiB).
    vmem_limit = int(min(cap, max(vmem_needed(tb) * 3 // 2, 32 * 1024 * 1024)))

    out = pl.pallas_call(
        sdqn_kernel,
        out_shape=jax.ShapeDtypeStruct((b_pad, out_pad), jnp.bfloat16),
        grid=grid,
        in_specs=[x_spec] + param_specs,
        out_specs=out_spec,
        compiler_params=pltpu.CompilerParams(
            dimension_semantics=("parallel",),      # batch tiles -> both v7x cores
            vmem_limit_bytes=vmem_limit,
        ),
        cost_estimate=cost,
    )(x, *flat_params)

    return out[:B, :outputs].astype(jnp.float32)


# ----------------------------------------------------------------------------
# Synthetic params + pure-JAX reference
# ----------------------------------------------------------------------------
def init_params(key, inputs, outputs, hiddens, feature_size):
    """Deterministic synthetic parameters; layer shapes match SDQN.__init__."""
    dims = [
        (hiddens, inputs),        # encoder L1
        (hiddens, hiddens),       # encoder L2
        (feature_size, hiddens),  # encoder L3 (output layer)
        (hiddens, feature_size),  # head L1
        (hiddens, hiddens),       # head L2
        (outputs, hiddens),       # head L3 (output layer)
    ]
    params = []
    for (out_d, in_d) in dims:
        key, kw, kb = jax.random.split(key, 3)
        bound = 1.0 / jnp.sqrt(in_d)
        w = jax.random.uniform(kw, (out_d, in_d), jnp.float32, -bound, bound)
        b = jax.random.uniform(kb, (out_d,), jnp.float32, -bound, bound)
        params.append((w, b))
    return params


def sdqn_reference(x, params):
    """Pure-JAX f32 reference of the PyTorch module forward."""
    def lin(h, w, b):
        return h @ w.T + b
    (w1, b1), (w2, b2), (w3, b3), (w4, b4), (w5, b5), (w6, b6) = params
    h = jnp.maximum(lin(x, w1, b1), 0.0)
    h = jnp.maximum(lin(h, w2, b2), 0.0)
    f = lin(h, w3, b3)
    f = f / jnp.linalg.norm(f, axis=1, keepdims=True)
    h = jnp.maximum(lin(f, w4, b4), 0.0)
    h = jnp.maximum(lin(h, w5, b5), 0.0)
    return lin(h, w6, b6)


if __name__ == "__main__":
    # Small shapes consistent with the module's flat-input MLP forward.
    B, INPUTS, OUTPUTS, HIDDENS, FEATURE = 8, 32, 4, 64, 32

    key = jax.random.PRNGKey(0)
    key, kx = jax.random.split(key)
    x = jax.random.normal(kx, (B, INPUTS), jnp.float32)
    params = init_params(key, INPUTS, OUTPUTS, HIDDENS, FEATURE)

    # Weight transpose / bf16 cast / 128-lane padding happen once, here.
    flat_params, n_out, in_pad, out_pad = prepare_params(params)

    fwd = functools.partial(sdqn_forward, outputs=n_out, in_pad=in_pad,
                            out_pad=out_pad)
    out = fwd(x, flat_params)
    out = jax.block_until_ready(out)

    ref = sdqn_reference(x, params)
    assert out.shape == (B, OUTPUTS)
    max_err = float(jnp.max(jnp.abs(out - ref)))
    # bf16 matmul operands + bf16 output writeback -> ~1e-2-level deviation.
    assert jnp.allclose(out, ref, atol=7e-2, rtol=7e-2), (
        f"mismatch vs reference, max abs err={max_err}")

    print("KERNEL_OK")
</pallas_src>

<mosaic_0001>
module attributes {stable_mosaic.version = 11 : i64} {
  func.func @sdqn_kernel(%arg0: i32, %arg1: memref<8x128xf32, #tpu.memory_space<vmem>>, %arg2: memref<128x128xbf16, #tpu.memory_space<vmem>>, %arg3: memref<1x128xf32, #tpu.memory_space<vmem>>, %arg4: memref<128x128xbf16, #tpu.memory_space<vmem>>, %arg5: memref<1x128xf32, #tpu.memory_space<vmem>>, %arg6: memref<128x128xbf16, #tpu.memory_space<vmem>>, %arg7: memref<1x128xf32, #tpu.memory_space<vmem>>, %arg8: memref<128x128xbf16, #tpu.memory_space<vmem>>, %arg9: memref<1x128xf32, #tpu.memory_space<vmem>>, %arg10: memref<128x128xbf16, #tpu.memory_space<vmem>>, %arg11: memref<1x128xf32, #tpu.memory_space<vmem>>, %arg12: memref<128x128xbf16, #tpu.memory_space<vmem>>, %arg13: memref<1x128xf32, #tpu.memory_space<vmem>>, %arg14: memref<8x128xbf16, #tpu.memory_space<vmem>>) attributes {dimension_semantics = [#tpu.dimension_semantics<parallel>], iteration_bounds = array<i64: 1>, scalar_prefetch = 0 : i64, scratch_operands = 0 : i64, tpu.core_type = #tpu.core_type<tc>, window_params = [{transform_indices = @transform_0, window_bounds = array<i64: 8, 128>}, {pipeline_mode = #tpu.pipeline_mode<synchronous>, transform_indices = @transform_1, window_bounds = array<i64: 128, 128>}, {pipeline_mode = #tpu.pipeline_mode<synchronous>, transform_indices = @transform_2, window_bounds = array<i64: 1, 128>}, {pipeline_mode = #tpu.pipeline_mode<synchronous>, transform_indices = @transform_3, window_bounds = array<i64: 128, 128>}, {pipeline_mode = #tpu.pipeline_mode<synchronous>, transform_indices = @transform_4, window_bounds = array<i64: 1, 128>}, {pipeline_mode = #tpu.pipeline_mode<synchronous>, transform_indices = @transform_5, window_bounds = array<i64: 128, 128>}, {pipeline_mode = #tpu.pipeline_mode<synchronous>, transform_indices = @transform_6, window_bounds = array<i64: 1, 128>}, {pipeline_mode = #tpu.pipeline_mode<synchronous>, transform_indices = @transform_7, window_bounds = array<i64: 128, 128>}, {pipeline_mode = #tpu.pipeline_mode<synchronous>, transform_indices = @transform_8, window_bounds = array<i64: 1, 128>}, {pipeline_mode = #tpu.pipeline_mode<synchronous>, transform_indices = @transform_9, window_bounds = array<i64: 128, 128>}, {pipeline_mode = #tpu.pipeline_mode<synchronous>, transform_indices = @transform_10, window_bounds = array<i64: 1, 128>}, {pipeline_mode = #tpu.pipeline_mode<synchronous>, transform_indices = @transform_11, window_bounds = array<i64: 128, 128>}, {pipeline_mode = #tpu.pipeline_mode<synchronous>, transform_indices = @transform_12, window_bounds = array<i64: 1, 128>}, {transform_indices = @transform_13, window_bounds = array<i64: 8, 128>}]} {
    %c0 = arith.constant 0 : index
    %c0_0 = arith.constant 0 : index
    %0 = vector.load %arg1[%c0, %c0_0] : memref<8x128xf32, #tpu.memory_space<vmem>>, vector<8x128xf32>
    %1 = arith.truncf %0 : vector<8x128xf32> to vector<8x128xbf16>
    %c0_1 = arith.constant 0 : index
    %c0_2 = arith.constant 0 : index
    %2 = vector.load %arg2[%c0_1, %c0_2] : memref<128x128xbf16, #tpu.memory_space<vmem>>, vector<128x128xbf16>
    %cst = arith.constant dense<0.000000e+00> : vector<8x128xf32>
    %3 = tpu.matmul %1, %2, %cst {dimension_numbers = #tpu.dot_dimension_numbers<[1], [0], [0], [1], [0, 0, 1, 1], [], []>} : vector<8x128xbf16>, vector<128x128xbf16>, vector<8x128xf32> -> vector<8x128xf32>
    %c0_3 = arith.constant 0 : index
    %c0_4 = arith.constant 0 : index
    %4 = vector.load %arg3[%c0_3, %c0_4] : memref<1x128xf32, #tpu.memory_space<vmem>>, vector<1x128xf32>
    %5 = vector.broadcast %4 : vector<1x128xf32> to vector<8x128xf32>
    %6 = arith.addf %3, %5 : vector<8x128xf32>
    %cst_5 = arith.constant 0.000000e+00 : f32
    %7 = vector.broadcast %cst_5 : f32 to vector<8x128xf32>
    %8 = arith.maximumf %6, %7 : vector<8x128xf32>
    %9 = arith.truncf %8 : vector<8x128xf32> to vector<8x128xbf16>
    %c0_6 = arith.constant 0 : index
    %c0_7 = arith.constant 0 : index
    %10 = vector.load %arg4[%c0_6, %c0_7] : memref<128x128xbf16, #tpu.memory_space<vmem>>, vector<128x128xbf16>
    %cst_8 = arith.constant dense<0.000000e+00> : vector<8x128xf32>
    %11 = tpu.matmul %9, %10, %cst_8 {dimension_numbers = #tpu.dot_dimension_numbers<[1], [0], [0], [1], [0, 0, 1, 1], [], []>} : vector<8x128xbf16>, vector<128x128xbf16>, vector<8x128xf32> -> vector<8x128xf32>
    %c0_9 = arith.constant 0 : index
    %c0_10 = arith.constant 0 : index
    %12 = vector.load %arg5[%c0_9, %c0_10] : memref<1x128xf32, #tpu.memory_space<vmem>>, vector<1x128xf32>
    %13 = vector.broadcast %12 : vector<1x128xf32> to vector<8x128xf32>
    %14 = arith.addf %11, %13 : vector<8x128xf32>
    %cst_11 = arith.constant 0.000000e+00 : f32
    %15 = vector.broadcast %cst_11 : f32 to vector<8x128xf32>
    %16 = arith.maximumf %14, %15 : vector<8x128xf32>
    %17 = arith.truncf %16 : vector<8x128xf32> to vector<8x128xbf16>
    %c0_12 = arith.constant 0 : index
    %c0_13 = arith.constant 0 : index
    %18 = vector.load %arg6[%c0_12, %c0_13] : memref<128x128xbf16, #tpu.memory_space<vmem>>, vector<128x128xbf16>
    %cst_14 = arith.constant dense<0.000000e+00> : vector<8x128xf32>
    %19 = tpu.matmul %17, %18, %cst_14 {dimension_numbers = #tpu.dot_dimension_numbers<[1], [0], [0], [1], [0, 0, 1, 1], [], []>} : vector<8x128xbf16>, vector<128x128xbf16>, vector<8x128xf32> -> vector<8x128xf32>
    %c0_15 = arith.constant 0 : index
    %c0_16 = arith.constant 0 : index
    %20 = vector.load %arg7[%c0_15, %c0_16] : memref<1x128xf32, #tpu.memory_space<vmem>>, vector<1x128xf32>
    %21 = vector.broadcast %20 : vector<1x128xf32> to vector<8x128xf32>
    %22 = arith.addf %19, %21 : vector<8x128xf32>
    %23 = arith.mulf %22, %22 : vector<8x128xf32>
    %cst_17 = arith.constant dense<0.000000e+00> : vector<8xf32>
    %24 = vector.multi_reduction <add>, %23, %cst_17 [1] : vector<8x128xf32> to vector<8xf32>
    %25 = vector.shape_cast %24 : vector<8xf32> to vector<8x1xf32>
    %cst_18 = arith.constant 9.99999996E-13 : f32
    %26 = vector.broadcast %cst_18 : f32 to vector<8x1xf32>
    %27 = arith.addf %25, %26 : vector<8x1xf32>
    %28 = math.rsqrt %27 : vector<8x1xf32>
    %29 = vector.broadcast %28 : vector<8x1xf32> to vector<8x128xf32>
    %30 = arith.mulf %22, %29 : vector<8x128xf32>
    %31 = arith.truncf %30 : vector<8x128xf32> to vector<8x128xbf16>
    %c0_19 = arith.constant 0 : index
    %c0_20 = arith.constant 0 : index
    %32 = vector.load %arg8[%c0_19, %c0_20] : memref<128x128xbf16, #tpu.memory_space<vmem>>, vector<128x128xbf16>
    %cst_21 = arith.constant dense<0.000000e+00> : vector<8x128xf32>
    %33 = tpu.matmul %31, %32, %cst_21 {dimension_numbers = #tpu.dot_dimension_numbers<[1], [0], [0], [1], [0, 0, 1, 1], [], []>} : vector<8x128xbf16>, vector<128x128xbf16>, vector<8x128xf32> -> vector<8x128xf32>
    %c0_22 = arith.constant 0 : index
    %c0_23 = arith.constant 0 : index
    %34 = vector.load %arg9[%c0_22, %c0_23] : memref<1x128xf32, #tpu.memory_space<vmem>>, vector<1x128xf32>
    %35 = vector.broadcast %34 : vector<1x128xf32> to vector<8x128xf32>
    %36 = arith.addf %33, %35 : vector<8x128xf32>
    %cst_24 = arith.constant 0.000000e+00 : f32
    %37 = vector.broadcast %cst_24 : f32 to vector<8x128xf32>
    %38 = arith.maximumf %36, %37 : vector<8x128xf32>
    %39 = arith.truncf %38 : vector<8x128xf32> to vector<8x128xbf16>
    %c0_25 = arith.constant 0 : index
    %c0_26 = arith.constant 0 : index
    %40 = vector.load %arg10[%c0_25, %c0_26] : memref<128x128xbf16, #tpu.memory_space<vmem>>, vector<128x128xbf16>
    %cst_27 = arith.constant dense<0.000000e+00> : vector<8x128xf32>
    %41 = tpu.matmul %39, %40, %cst_27 {dimension_numbers = #tpu.dot_dimension_numbers<[1], [0], [0], [1], [0, 0, 1, 1], [], []>} : vector<8x128xbf16>, vector<128x128xbf16>, vector<8x128xf32> -> vector<8x128xf32>
    %c0_28 = arith.constant 0 : index
    %c0_29 = arith.constant 0 : index
    %42 = vector.load %arg11[%c0_28, %c0_29] : memref<1x128xf32, #tpu.memory_space<vmem>>, vector<1x128xf32>
    %43 = vector.broadcast %42 : vector<1x128xf32> to vector<8x128xf32>
    %44 = arith.addf %41, %43 : vector<8x128xf32>
    %cst_30 = arith.constant 0.000000e+00 : f32
    %45 = vector.broadcast %cst_30 : f32 to vector<8x128xf32>
    %46 = arith.maximumf %44, %45 : vector<8x128xf32>
    %47 = arith.truncf %46 : vector<8x128xf32> to vector<8x128xbf16>
    %c0_31 = arith.constant 0 : index
    %c0_32 = arith.constant 0 : index
    %48 = vector.load %arg12[%c0_31, %c0_32] : memref<128x128xbf16, #tpu.memory_space<vmem>>, vector<128x128xbf16>
    %cst_33 = arith.constant dense<0.000000e+00> : vector<8x128xf32>
    %49 = tpu.matmul %47, %48, %cst_33 {dimension_numbers = #tpu.dot_dimension_numbers<[1], [0], [0], [1], [0, 0, 1, 1], [], []>} : vector<8x128xbf16>, vector<128x128xbf16>, vector<8x128xf32> -> vector<8x128xf32>
    %c0_34 = arith.constant 0 : index
    %c0_35 = arith.constant 0 : index
    %50 = vector.load %arg13[%c0_34, %c0_35] : memref<1x128xf32, #tpu.memory_space<vmem>>, vector<1x128xf32>
    %51 = vector.broadcast %50 : vector<1x128xf32> to vector<8x128xf32>
    %52 = arith.addf %49, %51 : vector<8x128xf32>
    %53 = arith.truncf %52 : vector<8x128xf32> to vector<8x128xbf16>
    %c0_36 = arith.constant 0 : index
    %c0_37 = arith.constant 0 : index
    %54 = vector.load %arg14[%c0_36, %c0_37] : memref<8x128xbf16, #tpu.memory_space<vmem>>, vector<8x128xbf16>
    tpu.vector_store %arg14[%c0_36, %c0_37], %53 {strides = array<i32>} : memref<8x128xbf16, #tpu.memory_space<vmem>>, vector<8x128xbf16>,
    return
  }
  func.func @transform_0(%arg0: i32) -> (i32, i32) {
    %c0_i32 = arith.constant 0 : i32
    %c0_i32_0 = arith.constant 0 : i32
    return %arg0, %c0_i32 : i32, i32
  }
  func.func @transform_1(%arg0: i32) -> (i32, i32) {
    %c0_i32 = arith.constant 0 : i32
    %c0_i32_0 = arith.constant 0 : i32
    %c0_i32_1 = arith.constant 0 : i32
    return %c0_i32, %c0_i32_0 : i32, i32
  }
  func.func @transform_2(%arg0: i32) -> (i32, i32) {
    %c0_i32 = arith.constant 0 : i32
    %c0_i32_0 = arith.constant 0 : i32
    %c0_i32_1 = arith.constant 0 : i32
    return %c0_i32, %c0_i32_0 : i32, i32
  }
  func.func @transform_3(%arg0: i32) -> (i32, i32) {
    %c0_i32 = arith.constant 0 : i32
    %c0_i32_0 = arith.constant 0 : i32
    %c0_i32_1 = arith.constant 0 : i32
    return %c0_i32, %c0_i32_0 : i32, i32
  }
  func.func @transform_4(%arg0: i32) -> (i32, i32) {
    %c0_i32 = arith.constant 0 : i32
    %c0_i32_0 = arith.constant 0 : i32
    %c0_i32_1 = arith.constant 0 : i32
    return %c0_i32, %c0_i32_0 : i32, i32
  }
  func.func @transform_5(%arg0: i32) -> (i32, i32) {
    %c0_i32 = arith.constant 0 : i32
    %c0_i32_0 = arith.constant 0 : i32
    %c0_i32_1 = arith.constant 0 : i32
    return %c0_i32, %c0_i32_0 : i32, i32
  }
  func.func @transform_6(%arg0: i32) -> (i32, i32) {
    %c0_i32 = arith.constant 0 : i32
    %c0_i32_0 = arith.constant 0 : i32
    %c0_i32_1 = arith.constant 0 : i32
    return %c0_i32, %c0_i32_0 : i32, i32
  }
  func.func @transform_7(%arg0: i32) -> (i32, i32) {
    %c0_i32 = arith.constant 0 : i32
    %c0_i32_0 = arith.constant 0 : i32
    %c0_i32_1 = arith.constant 0 : i32
    return %c0_i32, %c0_i32_0 : i32, i32
  }
  func.func @transform_8(%arg0: i32) -> (i32, i32) {
    %c0_i32 = arith.constant 0 : i32
    %c0_i32_0 = arith.constant 0 : i32
    %c0_i32_1 = arith.constant 0 : i32
    return %c0_i32, %c0_i32_0 : i32, i32
  }
  func.func @transform_9(%arg0: i32) -> (i32, i32) {
    %c0_i32 = arith.constant 0 : i32
    %c0_i32_0 = arith.constant 0 : i32
    %c0_i32_1 = arith.constant 0 : i32
    return %c0_i32, %c0_i32_0 : i32, i32
  }
  func.func @transform_10(%arg0: i32) -> (i32, i32) {
    %c0_i32 = arith.constant 0 : i32
    %c0_i32_0 = arith.constant 0 : i32
    %c0_i32_1 = arith.constant 0 : i32
    return %c0_i32, %c0_i32_0 : i32, i32
  }
  func.func @transform_11(%arg0: i32) -> (i32, i32) {
    %c0_i32 = arith.constant 0 : i32
    %c0_i32_0 = arith.constant 0 : i32
    %c0_i32_1 = arith.constant 0 : i32
    return %c0_i32, %c0_i32_0 : i32, i32
  }
  func.func @transform_12(%arg0: i32) -> (i32, i32) {
    %c0_i32 = arith.constant 0 : i32
    %c0_i32_0 = arith.constant 0 : i32
    %c0_i32_1 = arith.constant 0 : i32
    return %c0_i32, %c0_i32_0 : i32, i32
  }
  func.func @transform_13(%arg0: i32) -> (i32, i32) {
    %c0_i32 = arith.constant 0 : i32
    %c0_i32_0 = arith.constant 0 : i32
    return %arg0, %c0_i32 : i32, i32
  }
}

</mosaic_0001>

<bundles_post_ra>
// kernel: tpu_custom_call.1
= control target key start
LH: loop header
LB: loop body
LE: loop exit
PB: predicated region body
PF: predicated region fallthrough
CT: control target
= control target key end

     0   :  { %18 = vsyncpa [#allocation3], 0  ;;  %s1286_s0 = inlined_call_operand.hbm [shape: f32[8,128], index: 0, kind: input, shape index: {}]   ;;  %s1287_s1 = inlined_call_operand.hbm [shape: bf16[128,128], index: 1, kind: input, shape index: {}]   ;;  %s1288_s2 = inlined_call_operand.vmem [shape: f32[1,128], index: 2, kind: input, shape index: {}]   ;;  %s1289_s3 = inlined_call_operand.hbm [shape: bf16[128,128], index: 3, kind: input, shape index: {}]   ;;  %s1290_s4 = inlined_call_operand.vmem [shape: f32[1,128], index: 4, kind: input, shape index: {}]   ;;  %s1291_s5 = inlined_call_operand.hbm [shape: bf16[128,128], index: 5, kind: input, shape index: {}]   ;;  %s1292_s6 = inlined_call_operand.vmem [shape: f32[1,128], index: 6, kind: input, shape index: {}]   ;;  %s1293_s7 = inlined_call_operand.hbm [shape: bf16[128,128], index: 7, kind: input, shape index: {}]   ;;  %s1294_s8 = inlined_call_operand.vmem [shape: f32[1,128], index: 8, kind: input, shape index: {}]   ;;  %s1295_s9 = inlined_call_operand.hbm [shape: bf16[128,128], index: 9, kind: input, shape index: {}]   ;;  %s1296_s10 = inlined_call_operand.vmem [shape: f32[1,128], index: 10, kind: input, shape index: {}]   ;;  %s1297_s11 = inlined_call_operand.hbm [shape: bf16[128,128], index: 11, kind: input, shape index: {}]   ;;  %s1298_s12 = inlined_call_operand.vmem [shape: f32[1,128], index: 12, kind: input, shape index: {}]   ;;  %s1299_s13 = inlined_call_operand.hbm [shape: bf16[8,128], index: 13, kind: output, shape index: {}]  }
   0x1   :  { %19 = vsyncpa [#allocation6], 0 }
   0x2   :  { %20 = vsyncpa [#allocation9], 0 }
   0x3   :  { %21 = vsyncpa [#allocation12], 0  ;;  %s38_s27 = sshll.u32 %s1287_s1, 4  ;;  %s39_s27 = int_to_ptr.hbm [resolvable:$true] %s38_s27 }
   0x4   :  { %22 = vsyncpa [#allocation4], 0  ;;  %s1146_s28 = smov [#allocation5]   ;;  %s68_s15 = sshll.u32 %s1291_s5, 4  ;;  %s69_s15 = int_to_ptr.hbm [resolvable:$true] %s68_s15 }
   0x5   :  { %s40_s29 = sshll.u32 %s1146_s28, 4  ;;  %s1147_s16 = smov 64   ;;  %s41_s29 = int_to_ptr.vmem [resolvable:$true] %s40_s29 }
   0x6   :  { %s1148_s17 = smov 4   ;;  %s1149_s18 = smov [#allocation8]  }
   0x7   :  { %46 = dma.hbm_to_vmem [thread:$0]  %s39_s27, 1024, %s41_s29, [#allocation6], %s1147_s16, %s1147_s16, %s1148_s17  }
   0x8   :  { %s70_s19 = sshll.u32 %s1149_s18, 4  ;;  %s98_s21 = sshll.u32 %s1295_s9, 4  ;;  %s71_s19 = int_to_ptr.vmem [resolvable:$true] %s70_s19  ;;  %s99_s21 = int_to_ptr.hbm [resolvable:$true] %s98_s21 }
   0x9   :  { %76 = dma.hbm_to_vmem [thread:$0]  %s69_s15, 1024, %s71_s19, [#allocation9], %s1147_s16, %s1147_s16, %s1148_s17  }
   0xa   :  { %s28_s23 = sshll.u32 %s1286_s0, 4  ;;  %s1150_s24 = smov [#allocation11]   ;;  %s29_s23 = int_to_ptr.hbm [resolvable:$true] %s28_s23 }
   0xb   :  { %s100_s25 = sshll.u32 %s1150_s24, 4  ;;  %s1151_s26 = smov [#allocation2]   ;;  %s101_s25 = int_to_ptr.vmem [resolvable:$true] %s100_s25 }
   0xc   :  { %106 = dma.hbm_to_vmem [thread:$0]  %s99_s21, 1024, %s101_s25, [#allocation12], %s1147_s16, %s1147_s16, %s1148_s17  }
   0xd   :  { %s30_s9 = sshll.u32 %s1151_s26, 4  ;;  %s53_s29 = sshll.u32 %s1289_s3, 4  ;;  %s31_s9 = int_to_ptr.vmem [resolvable:$true] %s30_s9  ;;  %s54_s29 = int_to_ptr.hbm [resolvable:$true] %s53_s29 }
   0xe   :  { %33 = dma.hbm_to_vmem [thread:$0]  %s29_s23, 128, %s31_s9, [#allocation3]  }
   0xf   :  { %s83_s0 = sshll.u32 %s1293_s7, 4  ;;  %s1152_s15 = smov [#allocation7]   ;;  %s84_s0 = int_to_ptr.hbm [resolvable:$true] %s83_s0 }
  0x10   :  { %s55_s18 = sshll.u32 %s1152_s15, 4  ;;  %s1153_s19 = smov [#allocation10]   ;;  %s56_s18 = int_to_ptr.vmem [resolvable:$true] %s55_s18 }
  0x11   :  { %61 = dma.hbm_to_vmem [thread:$0]  %s54_s29, 1024, %s56_s18, [#allocation6], %s1147_s16, %s1147_s16, %s1148_s17  }
  0x12   :  { %s85_s20 = sshll.u32 %s1153_s19, 4  ;;  %s113_s3 = sshll.u32 %s1297_s11, 4  ;;  %s86_s20 = int_to_ptr.vmem [resolvable:$true] %s85_s20  ;;  %s114_s3 = int_to_ptr.hbm [resolvable:$true] %s113_s3 }
  0x13   :  { %91 = dma.hbm_to_vmem [thread:$0]  %s84_s0, 1024, %s86_s20, [#allocation9], %s1147_s16, %s1147_s16, %s1148_s17  }
  0x14   :  { %s1154_s7 = smov [#allocation13]  }
  0x15   :  { %s115_s5 = sshll.u32 %s1154_s7, 4  ;;  %s116_s5 = int_to_ptr.vmem [resolvable:$true] %s115_s5 }
  0x16   :  { %121 = dma.hbm_to_vmem [thread:$0]  %s114_s3, 1024, %s116_s5, [#allocation12], %s1147_s16, %s1147_s16, %s1148_s17  }
  0x17   :  { %1136 = dma.done.wait [#allocation3], 128  }
  0x18   :  { %1137 = vsyncadd [#allocation3], 4294967168 }
  0x19   :  { %1138 = dma.done.wait [#allocation6], 2048  }
  0x1a   :  { %1139 = vsyncadd [#allocation6], 4294965248 }
  0x1b   :  { %1140 = dma.done.wait [#allocation9], 2048  }
  0x1c   :  { %1141 = vsyncadd [#allocation9], 4294965248 }
  0x1d   :  { %1142 = dma.done.wait [#allocation12], 2048  }
  0x1e   :  { %1143 = vsyncadd [#allocation12], 4294965248  ;;  %v885_v0 = vld [vmem:[#allocation5 + $0x38] sm:$0xff]  ;;  %v884_v1 = vld [vmem:[#allocation5 + $0x30] sm:$0xff]  ;;  %s1155_s9 = smov [#allocation14]   ;;  %s673_s30 = sshll.u32 %s1299_s13, 4  ;;  %s674_s30 = int_to_ptr.hbm [resolvable:$true] %s673_s30 }
  0x1f   :  { %222 = vmatpush.bf16.msra.mxu0 %v885_v0  ;;  %v893_v2 = vld [vmem:[#allocation7 + $0x38] sm:$0xff]  ;;  %v883_v3 = vld [vmem:[#allocation5 + $0x28] sm:$0xff]  ;;  %v892_v4 = vld [vmem:[#allocation7 + $0x30] sm:$0xff]  ;;  %s671_s27 = sshll.u32 %s1155_s9, 4  ;;  %s672_s27 = int_to_ptr.vmem [resolvable:$true] %s671_s27 }
  0x20   :  { %305 = vmatpush.bf16.msra.mxu1 %v893_v2  ;;  %v891_v5 = vld [vmem:[#allocation7 + $0x28] sm:$0xff]  ;;  %v882_v6 = vld [vmem:[#allocation5 + $0x20] sm:$0xff]  ;;  %v881_v8 = vld [vmem:[#allocation5 + $0x18] sm:$0xff] }
  0x21   :  { %v890_v7 = vld [vmem:[#allocation7 + $0x20] sm:$0xff]  ;;  %v889_v9 = vld [vmem:[#allocation7 + $0x18] sm:$0xff]  ;;  %v880_v10 = vld [vmem:[#allocation5 + $0x10] sm:$0xff] }
  0x22   :  { %v888_v11 = vld [vmem:[#allocation7 + $0x10] sm:$0xff]  ;;  %v879_v12 = vld [vmem:[#allocation5 + $0x8] sm:$0xff]  ;;  %v878_v13 = vld [vmem:[#allocation5] sm:$0xff] }
  0x23   :  { %223 = vmatpush.bf16.msra.mxu0 %v884_v1  ;;  %v152_v14 = vld [vmem:[#allocation2] sm:$0xff]  ;;  %v887_v16 = vld [vmem:[#allocation7 + $0x8] sm:$0xff]  ;;  %v886_v17 = vld [vmem:[#allocation7] sm:$0xff] }
  0x24   :  { %306 = vmatpush.bf16.msra.mxu1 %v892_v4  ;;  %v153_v15 = vpack.c.bf16 %v152_v14, %v152_v14  ;;  %v901_v18 = vld [vmem:[#allocation8 + $0x38] sm:$0xff]  ;;  %v900_v19 = vld [vmem:[#allocation8 + $0x30] sm:$0xff]  ;;  %v899_v20 = vld [vmem:[#allocation8 + $0x28] sm:$0xff] }
  0x25   :  { %388 = vmatpush.bf16.msra.mxu2 %v901_v18  ;;  %v898_v21 = vld [vmem:[#allocation8 + $0x20] sm:$0xff]  ;;  %v897_v22 = vld [vmem:[#allocation8 + $0x18] sm:$0xff]  ;;  %v896_v23 = vld [vmem:[#allocation8 + $0x10] sm:$0xff] }
  0x26   :  { %v936_v24 = vld [vmem:[%s1288_s2] ss:$0 sm:$0xff]  ;;  %v895_v30 = vld [vmem:[#allocation8 + $0x8] sm:$0xff]  ;;  %v894_v31 = vld [vmem:[#allocation8] sm:$0xff] }
  0x27   :  { %224 = vmatpush.bf16.msra.mxu0 %v883_v3  ;;  %v937_v32 = vld [vmem:[%s1290_s4] ss:$0 sm:$0xff]  ;;  %v908_v39 = vld [vmem:[#allocation10 + $0x30] sm:$0xff]  ;;  %v907_v45 = vld [vmem:[#allocation10 + $0x28] sm:$0xff] }
  0x28   :  { %307 = vmatpush.bf16.msra.mxu1 %v891_v5  ;;  %v909_v38 = vld [vmem:[#allocation10 + $0x38] sm:$0xff]  ;;  %v906_v46 = vld [vmem:[#allocation10 + $0x20] sm:$0xff]  ;;  %v904_v48 = vld [vmem:[#allocation10 + $0x10] sm:$0xff] }
  0x29   :  { %389 = vmatpush.bf16.msra.mxu2 %v900_v19  ;;  %485 = vmatpush.bf16.msra.mxu3 %v909_v38  ;;  %v938_v40 = vld [vmem:[%s1292_s6] ss:$0 sm:$0xff]  ;;  %v903_v49 = vld [vmem:[#allocation10 + $0x8] sm:$0xff]  ;;  %v902_v50 = vld [vmem:[#allocation10] sm:$0xff] }
  0x2a   :  { %v905_v47 = vld [vmem:[#allocation10 + $0x18] sm:$0xff]  ;;  %v916_v52 = vld [vmem:[#allocation11 + $0x30] sm:$0xff]  ;;  %v915_v53 = vld [vmem:[#allocation11 + $0x28] sm:$0xff] }
  0x2b   :  { %225 = vmatpush.bf16.msra.mxu0 %v882_v6  ;;  %v917_v51 = vld [vmem:[#allocation11 + $0x38] sm:$0xff]  ;;  %v914_v56 = vld [vmem:[#allocation11 + $0x20] sm:$0xff]  ;;  %v912_v60 = vld [vmem:[#allocation11 + $0x10] sm:$0xff] }
  0x2c   :  { %308 = vmatpush.bf16.msra.mxu1 %v890_v7  ;;  %v913_v57 = vld [vmem:[#allocation11 + $0x18] sm:$0xff]  ;;  %v911_v4 = vld [vmem:[#allocation11 + $0x8] sm:$0xff]  ;;  %v910_v5 = vld [vmem:[#allocation11] sm:$0xff] }
  0x2d   :  { %390 = vmatpush.bf16.msra.mxu2 %v899_v20  ;;  %486 = vmatpush.bf16.msra.mxu3 %v908_v39  ;;  %v925_v6 = vld [vmem:[#allocation13 + $0x38] sm:$0xff]  ;;  %v924_v7 = vld [vmem:[#allocation13 + $0x30] sm:$0xff]  ;;  %v919_v18 = vld [vmem:[#allocation13 + $0x8] sm:$0xff] }
  0x2e   :  { %v918_v19 = vld [vmem:[#allocation13] sm:$0xff]  ;;  %v940_v20 = vld [vmem:[%s1296_s10] ss:$0 sm:$0xff] }
  0x2f   :  { %226 = vmatpush.bf16.msra.mxu0 %v881_v8  ;;  %v923_v8 = vld [vmem:[#allocation13 + $0x28] sm:$0xff] }
  0x30   :  { %309 = vmatpush.bf16.msra.mxu1 %v889_v9  ;;  %v922_v9 = vld [vmem:[#allocation13 + $0x20] sm:$0xff] }
  0x31   :  { %391 = vmatpush.bf16.msra.mxu2 %v898_v21  ;;  %487 = vmatpush.bf16.msra.mxu3 %v907_v45 }
  0x33   :  { %227 = vmatpush.bf16.msra.mxu0 %v880_v10  ;;  %v921_v10 = vld [vmem:[#allocation13 + $0x18] sm:$0xff] }
  0x34   :  { %310 = vmatpush.bf16.msra.mxu1 %v888_v11  ;;  %v920_v11 = vld [vmem:[#allocation13 + $0x10] sm:$0xff] }
  0x35   :  { %392 = vmatpush.bf16.msra.mxu2 %v897_v22  ;;  %488 = vmatpush.bf16.msra.mxu3 %v906_v46 }
  0x37   :  { %228 = vmatpush.bf16.msra.mxu0 %v879_v12  ;;  %v939_v12 = vld [vmem:[%s1294_s8] ss:$0 sm:$0xff] }
  0x38   :  { %311 = vmatpush.bf16.msra.mxu1 %v887_v16 }
  0x39   :  { %393 = vmatpush.bf16.msra.mxu2 %v896_v23  ;;  %489 = vmatpush.bf16.msra.mxu3 %v905_v47 }
  0x3b   :  { %229 = vmatpush.bf16.msra.mxu0 %v878_v13 }
  0x3c   :  { %312 = vmatpush.bf16.msra.mxu1 %v886_v17 }
  0x3d   :  { %394 = vmatpush.bf16.msra.mxu2 %v895_v30  ;;  %490 = vmatpush.bf16.msra.mxu3 %v904_v48 }
  0x3e   :  { %230 = vmatmul.bf16.vlgmr.msra.gmra.mxu0 %v153_v15 }
  0x3f   :  { %568 = vmatpush.bf16.msrb.mxu0 %v917_v51 }
  0x40   :  { %651 = vmatpush.bf16.msrb.mxu1 %v925_v6 }
  0x41   :  { %395 = vmatpush.bf16.msra.mxu2 %v894_v31  ;;  %491 = vmatpush.bf16.msra.mxu3 %v903_v49 }
  0x43   :  { %569 = vmatpush.bf16.msrb.mxu0 %v916_v52 }
  0x44   :  { %652 = vmatpush.bf16.msrb.mxu1 %v924_v7 }
  0x45   :  { %492 = vmatpush.bf16.msra.mxu3 %v902_v50 }
  0x47   :  { %570 = vmatpush.bf16.msrb.mxu0 %v915_v53 }
  0x48   :  { %653 = vmatpush.bf16.msrb.mxu1 %v923_v8 }
  0x4b   :  { %571 = vmatpush.bf16.msrb.mxu0 %v914_v56 }
  0x4c   :  { %654 = vmatpush.bf16.msrb.mxu1 %v922_v9 }
  0x4f   :  { %572 = vmatpush.bf16.msrb.mxu0 %v913_v57 }
  0x50   :  { %655 = vmatpush.bf16.msrb.mxu1 %v921_v10 }
  0x53   :  { %573 = vmatpush.bf16.msrb.mxu0 %v912_v60 }
  0x54   :  { %656 = vmatpush.bf16.msrb.mxu1 %v920_v11 }
  0x57   :  { %574 = vmatpush.bf16.msrb.mxu0 %v911_v4 }
  0x58   :  { %657 = vmatpush.bf16.msrb.mxu1 %v919_v18 }
  0x5b   :  { %575 = vmatpush.bf16.msrb.mxu0 %v910_v5 }
  0x5c   :  { %658 = vmatpush.bf16.msrb.mxu1 %v918_v19 }
  0xbb   :  { %v231_v25 = vpop.f32.mrf.mxu0 }
  0xbc   :  { %v232_v26 = vadd.f32 %v936_v24, %v231_v25 }
  0xbe   :  { %v235_v27 = vmax.f32 %v232_v26, 0.0  ;;  %v941_v26 = vld [vmem:[%s1298_s12] ss:$0 sm:$0xff] }
  0xc0   :  { %v236_v28 = vpack.c.bf16 %v235_v27, %v235_v27 }
  0xc2   :  { %313 = vmatmul.bf16.vlgmr.msra.gmra.mxu1 %v236_v28 }
  0xc3   :  { %v233_v29 = vpop.f32.mrf.mxu0 }
 0x13f   :  { %v314_v33 = vpop.f32.mrf.mxu1 }
 0x140   :  { %v315_v34 = vadd.f32 %v937_v32, %v314_v33 }
 0x142   :  { %v318_v35 = vmax.f32 %v315_v34, 0.0 }
 0x144   :  { %v319_v36 = vpack.c.bf16 %v318_v35, %v318_v35 }
 0x146   :  { %396 = vmatmul.bf16.vlgmr.msra.gmra.mxu2 %v319_v36 }
 0x147   :  { %v316_v37 = vpop.f32.mrf.mxu1 }
 0x1c9   :  { %v397_v41 = vpop.f32.mrf.mxu2 }
 0x1ca   :  { %v398_v42 = vadd.f32 %v938_v40, %v397_v41 }
 0x1cc   :  { %v401_v43 = vmul.f32 %v398_v42, %v398_v42 }
 0x1ce   :  { %402 = vadd.xlane.f32.xlu0 %v401_v43 }
 0x1d1   :  { %v399_v44 = vpop.f32.mrf.mxu2 }
 0x241   :  { %v403_v54 = vpop.xlane.xlu0 %402 }
 0x242   :  { %v404_v55 = vadd.f32 1e-12, %v403_v54 }
 0x244   :  { %942 = vrsqrt.f32 %v404_v55  ;;  %vm411_vm1 = vweird.f32 %v404_v55 }
 0x24a   :  { %v943_v58 = vpop.eup %942 }
 0x24b   :  { %v406_v59 = vmul.f32 %v943_v58, %v404_v55  ;;  %vm412_vm0 = vweird.f32 %v943_v58 }
 0x24c   :  { %vm413_vm2 = vmor %vm411_vm1, %vm412_vm0 }
 0x24d   :  { %v407_v61 = vmul.f32 %v943_v58, %v406_v59 }
 0x24f   :  { %v408_v62 = vmul.f32 0.5, %v407_v61 }
 0x251   :  { %v409_v63 = vsub.f32 1.5, %v408_v62 }
 0x253   :  { %v410_v0 = vmul.f32 %v943_v58, %v409_v63 }
 0x255   :  { %v414_v1 = vsel %vm413_vm2, %v943_v58, %v410_v0 }
 0x256   :  { %v415_v2 = vmul.f32 %v414_v1, %v398_v42 }
 0x258   :  { %v416_v3 = vpack.c.bf16 %v415_v2, %v415_v2 }
 0x25a   :  { %493 = vmatmul.bf16.vlgmr.msra.gmra.mxu3 %v416_v3 }
 0x2dd   :  { %v494_v13 = vpop.f32.mrf.mxu3 }
 0x2de   :  { %v495_v14 = vadd.f32 %v939_v12, %v494_v13 }
 0x2e0   :  { %v498_v15 = vmax.f32 %v495_v14, 0.0 }
 0x2e2   :  { %v499_v16 = vpack.c.bf16 %v498_v15, %v498_v15 }
 0x2e4   :  { %576 = vmatmul.bf16.vlgmr.msrb.gmra.mxu0 %v499_v16 }
 0x2e5   :  { %v496_v17 = vpop.f32.mrf.mxu3 }
 0x361   :  { %v577_v21 = vpop.f32.mrf.mxu0 }
 0x362   :  { %v578_v22 = vadd.f32 %v940_v20, %v577_v21 }
 0x364   :  { %v581_v23 = vmax.f32 %v578_v22, 0.0 }
 0x366   :  { %v582_v24 = vpack.c.bf16 %v581_v23, %v581_v23 }
 0x368   :  { %659 = vmatmul.bf16.vlgmr.msrb.gmra.mxu1 %v582_v24 }
 0x369   :  { %v579_v25 = vpop.f32.mrf.mxu0 }
 0x3e5   :  { %v660_v27 = vpop.f32.mrf.mxu1 }
 0x3e6   :  { %v661_v28 = vadd.f32 %v941_v26, %v660_v27 }
 0x3e8   :  { %v664_v29 = vpack.c.bf16 %v661_v28, %v661_v28 }
 0x3ea   :  { %665 = vst [vmem:[#allocation14] sm:$0xf] %v664_v29 }
 0x3eb   :  { %676 = dma.vmem_to_hbm [thread:$0]  %s672_s27, 64, %s674_s30, [#allocation4]  }
 0x3ed   :  { %v662_v30 = vpop.f32.mrf.mxu1 }
 0x3ee   :  { %1144 = dma.done.wait [#allocation4], 64  }
 0x3ef   :  { %1145 = vsyncadd [#allocation4], 4294967232 }
 0x3f0   :  { %681 = vsyncpa [#allocation3], 1 }
 0x3f1   :  { %682 = vsyncpa [#allocation6], 1 }
 0x3f2   :  { %683 = vsyncpa [#allocation9], 1 }
 0x3f3   :  { %684 = vsyncpa [#allocation12], 1 }
 0x3f4   :  { %685 = vsyncpa [#allocation4], 1 }

</bundles_post_ra>
